<compile_context>
chip_gen: v7x
topology: tpu7x:2x2x1
jax: 0.10.0
libtpu: 0.0.40
codegen_flags: <defaults>
</compile_context>

<pallas_src>
import functools

import jax
import jax.numpy as jnp
from jax.experimental import pallas as pl
from jax.experimental.pallas import tpu as pltpu


def _sum01(a):
    """Sum a (B, R, TC) f32 value over axes (0, 1) -> (1, 1, TC).

    Two single-axis reductions (sublane reduce, then leading-dim reduce): the
    best-supported reduction pattern on Mosaic."""
    return jnp.sum(jnp.sum(a, axis=1, keepdims=True), axis=0, keepdims=True)


def _roll_rows(z, shift, length):
    """Circular shift of (B, L, TC) along axis 1: out[:, l] = z[:, (l - shift) % L]."""
    shift = shift % length
    if shift == 0:
        return z
    return jnp.concatenate(
        [z[:, length - shift:, :], z[:, :length - shift, :]], axis=1)


def _conv_layer_kernel(x_ref, w_ref, b_ref, g_ref, beta_ref, o_ref, yp_ref, *,
                       conv_pad, eps):
    """Fused circular-Conv1d + BatchNorm1d (batch stats) + ELU + MaxPool1d.

    Ref shapes for one output-channel tile of width TC:
      x_ref   : (B, L, Cin)       input, native channels-last layout / dtype
      w_ref   : (K, Cin, TC)      Conv1d weight rearranged for matmul, x.dtype
      b_ref   : (1, TC)  f32      Conv1d bias
      g_ref   : (1, TC)  f32      BatchNorm gamma
      beta_ref: (1, TC)  f32      BatchNorm beta
      o_ref   : (B, Lp, TC)       output, already in the final (B, Lp, C) layout
      yp_ref  : (B, 2*Lp+1, TC)   f32 VMEM scratch for the max-pool windows
    """
    B, L, Cin = x_ref.shape
    K = w_ref.shape[0]
    TC = o_ref.shape[-1]
    Lp = o_ref.shape[1]
    Sp = yp_ref.shape[1]                  # = 2*Lp + 1
    Lc = L + 2 * conv_pad - K + 1         # conv output length (= L + 2)
    nd = Lc - L                           # circularly duplicated conv rows (= 2)

    # --- Conv1d(C, C, k=K, padding=conv_pad, padding_mode='circular') --------
    # conv[b, l, co] = bias[co] + sum_k (x[b] @ W_k)[(l + k - pad) % L, co]
    # One large (B*L, Cin) @ (Cin, TC) MXU matmul per tap (batch folded into M),
    # default MXU precision in the input dtype, f32 accumulation; the circular
    # padding is realized with sublane rolls.  Rows [L, Lc) duplicate rows
    # [0, nd) and are never recomputed.
    xf = x_ref[...].reshape(B * L, Cin)   # native dtype straight to the MXU
    conv = None
    for k in range(K):
        z = jnp.dot(xf, w_ref[k],
                    preferred_element_type=jnp.float32).reshape(B, L, TC)
        z = _roll_rows(z, conv_pad - k, L)
        conv = z if conv is None else conv + z
    conv = conv + b_ref[...].astype(jnp.float32)       # (1, TC) broadcasts

    # --- BatchNorm1d, training-mode batch statistics (biased variance) -------
    # Statistics run over all B*Lc conv positions; the nd duplicated rows are
    # counted twice via the small extra partial sums (two-pass centered
    # variance for numerical robustness).
    # TODO(synk): the running_mean/running_var momentum update (a train-time
    # buffer mutation of nn.BatchNorm1d) is not emitted; the forward math
    # matches PyTorch train mode exactly.
    n = B * Lc
    mean = (_sum01(conv) + _sum01(conv[:, :nd, :])) * (1.0 / n)      # (1,1,TC)
    d = conv - mean
    var = (_sum01(d * d) + _sum01(d[:, :nd, :] * d[:, :nd, :])) * (1.0 / n)
    scale = g_ref[...].astype(jnp.float32) * jax.lax.rsqrt(var + eps)
    shift = beta_ref[...].astype(jnp.float32) - mean * scale

    # --- ELU(alpha=1), fused with the BN affine transform --------------------
    yb = conv * scale + shift
    y = jnp.where(yb > 0.0, yb, jnp.exp(jnp.minimum(yb, 0.0)) - 1.0)  # (B,L,TC)

    # --- MaxPool1d(kernel_size=3, stride=2, padding=1), -inf padding ---------
    # pooled[i] = max(yc[2i-1], yc[2i], yc[2i+1]) where yc is the Lc-long
    # activation (yc[L:] duplicates y[:, :nd]) and out-of-range rows are -inf.
    # Scratch layout: yp[0] = -inf, yp[1:Lc+1] = yc, (yp[Lc+1] = -inf iff Lc is
    # odd); then pooled = max of three stride-2 sublane windows, fully
    # vectorized over B (no per-batch loop, no full -inf fill).
    yp_ref[:, 0:1, :] = jnp.full((B, 1, TC), -jnp.inf, jnp.float32)
    yp_ref[:, 1:L + 1, :] = y
    yp_ref[:, L + 1:Lc + 1, :] = y[:, :nd, :]
    if Sp > Lc + 1:                       # odd Lc: right-side pool padding row
        yp_ref[:, Lc + 1:Sp, :] = jnp.full((B, Sp - Lc - 1, TC), -jnp.inf,
                                           jnp.float32)
    w0 = yp_ref[:, pl.ds(0, Lp, 2), :]
    w1 = yp_ref[:, pl.ds(1, Lp, 2), :]
    w2 = yp_ref[:, pl.ds(2, Lp, 2), :]
    o_ref[...] = jnp.maximum(jnp.maximum(w0, w1), w2).astype(o_ref.dtype)


def conv_layer_pallas(x, conv_w, conv_b, bn_gamma, bn_beta, *, eps=1e-5):
    """Pallas TPU forward of `ConvLayer`.

    x       : (B, L, C)  -- the tensor the PyTorch module receives
    conv_w  : (C, C, K)  -- nn.Conv1d weight (out_channels, in_channels, K)
    conv_b  : (C,)       -- nn.Conv1d bias
    bn_gamma: (C,)       -- nn.BatchNorm1d weight
    bn_beta : (C,)       -- nn.BatchNorm1d bias
    returns : (B, Lp, C) with Lp = (L + 1) // 2 + 1, exactly like the module.
    """
    B, L, C = x.shape
    K = conv_w.shape[-1]               # 3
    conv_pad = 2                       # the module hard-codes padding=2
    Lc = L + 2 * conv_pad - K + 1      # = L + 2
    Lp = (Lc - 1) // 2 + 1
    Sp = 2 * Lp + 1                    # pooling-scratch rows

    # Output-channel (lane) tile.  Keep >= 2 tiles whenever C allows it so the
    # ("parallel",) grid axis can shard across v7x's two TensorCores; C that is
    # not a multiple of 128 falls back to one full-width (lane-sparse, masked
    # store) tile -- pad C to a multiple of 128 upstream if that path matters.
    if C % 128 == 0:
        tc = 256 if (C % 256 == 0 and C // 256 >= 2) else 128
    else:
        tc = C
    n_ct = C // tc

    # Tiny parameter re-layouts (C*C*K elements), not a full-array HBM pass.
    # Conv weights stay in the activation dtype so bf16 inputs hit the MXU
    # natively; bias / BN affine parameters stay f32.
    w_r = jnp.transpose(conv_w, (2, 1, 0)).astype(x.dtype)    # (K, Cin, Cout)
    b_r = conv_b.reshape(1, C).astype(jnp.float32)
    g_r = bn_gamma.reshape(1, C).astype(jnp.float32)
    be_r = bn_beta.reshape(1, C).astype(jnp.float32)

    kernel = functools.partial(_conv_layer_kernel, conv_pad=conv_pad, eps=eps)

    x_item = jnp.dtype(x.dtype).itemsize
    w_item = jnp.dtype(w_r.dtype).itemsize
    x_bytes = B * L * C * x_item
    out_bytes = B * Lp * C * x_item
    w_bytes = K * C * C * w_item

    # Per-step VMEM: x (single-buffered, resident), weight/bias tiles (double-
    # buffered), output tile (double-buffered), pool scratch, plus headroom for
    # the f32 conv/activation temporaries.  Capped at 56 MiB for v7x (64 MiB
    # physical VMEM per TensorCore); v5e/v6e have 128 MiB so the cap is safe.
    vmem_need = (x_bytes
                 + 2 * (K * C * tc * w_item + 3 * tc * 4)
                 + 2 * B * Lp * tc * x_item
                 + B * Sp * tc * 4
                 + 3 * B * L * tc * 4)
    vmem_limit = int(min(max(vmem_need + (4 << 20), 32 << 20), 56 << 20))

    cost = pl.CostEstimate(
        flops=2 * B * L * C * C * K + 12 * B * Lc * C,
        transcendentals=B * Lc * C,
        bytes_accessed=x_bytes + w_bytes + out_bytes)

    return pl.pallas_call(
        kernel,
        out_shape=jax.ShapeDtypeStruct((B, Lp, C), x.dtype),
        grid=(n_ct,),
        in_specs=[
            # x: resident across the whole grid, DMA'd from HBM exactly once;
            # single-buffered since its block index never changes.
            pl.BlockSpec((B, L, C), lambda j: (0, 0, 0),
                         pipeline_mode=pl.Buffered(1)),
            pl.BlockSpec((K, C, tc), lambda j: (0, 0, j)),    # conv weight tile
            pl.BlockSpec((1, tc), lambda j: (0, j)),          # conv bias tile
            pl.BlockSpec((1, tc), lambda j: (0, j)),          # BN gamma tile
            pl.BlockSpec((1, tc), lambda j: (0, j)),          # BN beta tile
        ],
        out_specs=pl.BlockSpec((B, Lp, tc), lambda j: (0, 0, j)),
        scratch_shapes=[pltpu.VMEM((B, Sp, tc), jnp.float32)],
        compiler_params=pltpu.CompilerParams(
            dimension_semantics=("parallel",),
            vmem_limit_bytes=vmem_limit),
        cost_estimate=cost,
    )(x, w_r, b_r, g_r, be_r)


def _reference(x, conv_w, conv_b, gamma, beta, eps=1e-5):
    """Pure-JAX f32 reference mirroring the PyTorch forward (train-mode BN)."""
    B, L, C = x.shape
    K = conv_w.shape[-1]
    pad = 2
    xt = jnp.swapaxes(x, 1, 2).astype(jnp.float32)                   # (B, C, L)
    xp = jnp.concatenate([xt[..., L - pad:], xt, xt[..., :pad]], axis=-1)
    Lc = L + 2 * pad - K + 1
    conv = jnp.zeros((B, C, Lc), jnp.float32) + conv_b[None, :, None]
    for k in range(K):
        conv = conv + jnp.einsum('oi,bil->bol',
                                 conv_w[:, :, k].astype(jnp.float32),
                                 xp[:, :, k:k + Lc],
                                 precision=jax.lax.Precision.HIGHEST)
    mean = conv.mean(axis=(0, 2), keepdims=True)
    var = ((conv - mean) ** 2).mean(axis=(0, 2), keepdims=True)
    yn = (conv - mean) / jnp.sqrt(var + eps) * gamma[None, :, None] \
        + beta[None, :, None]
    y = jnp.where(yn > 0.0, yn, jnp.exp(jnp.minimum(yn, 0.0)) - 1.0)
    ypad = jnp.concatenate([jnp.full((B, C, 1), -jnp.inf, jnp.float32), y,
                            jnp.full((B, C, 1), -jnp.inf, jnp.float32)], axis=-1)
    Lp = (Lc - 1) // 2 + 1
    pooled = jnp.stack(
        [ypad[:, :, 2 * i:2 * i + 3].max(axis=-1) for i in range(Lp)], axis=-1)
    return jnp.swapaxes(pooled, 1, 2)                                 # (B, Lp, C)


if __name__ == "__main__":
    key = jax.random.PRNGKey(0)
    k1, k2, k3, k4, k5 = jax.random.split(key, 5)

    B, L, C, K = 2, 16, 8, 3

    x = jax.random.normal(k1, (B, L, C), jnp.float32)
    bound = 1.0 / (C * K) ** 0.5
    conv_w = bound * jax.random.normal(k2, (C, C, K), jnp.float32)   # Conv1d weight
    conv_b = bound * jax.random.normal(k3, (C,), jnp.float32)        # Conv1d bias
    bn_gamma = 1.0 + 0.1 * jax.random.normal(k4, (C,), jnp.float32)
    bn_beta = 0.1 * jax.random.normal(k5, (C,), jnp.float32)

    out = conv_layer_pallas(x, conv_w, conv_b, bn_gamma, bn_beta)
    out = jax.block_until_ready(out)

    ref = _reference(x, conv_w, conv_b, bn_gamma, bn_beta)
    Lp = (L + 1) // 2 + 1
    assert out.shape == (B, Lp, C), f"bad output shape {out.shape}"
    max_err = float(jnp.max(jnp.abs(out - ref)))
    # The kernel's conv matmuls run at default MXU precision (bf16 passes), so
    # the tolerance vs the f32 HIGHEST-precision reference is loosened.
    assert max_err < 5e-2, f"mismatch vs reference, max abs err = {max_err}"

    print("KERNEL_OK")
</pallas_src>

<mosaic_0001>
module attributes {stable_mosaic.version = 11 : i64} {
  func.func @_conv_layer_kernel(%arg0: i32, %arg1: memref<2x16x8xf32, #tpu.memory_space<vmem>>, %arg2: memref<3x8x8xf32, #tpu.memory_space<vmem>>, %arg3: memref<1x8xf32, #tpu.memory_space<vmem>>, %arg4: memref<1x8xf32, #tpu.memory_space<vmem>>, %arg5: memref<1x8xf32, #tpu.memory_space<vmem>>, %arg6: memref<2x9x8xf32, #tpu.memory_space<vmem>>, %arg7: memref<2x19x8xf32, #tpu.memory_space<vmem>>) attributes {dimension_semantics = [#tpu.dimension_semantics<parallel>], iteration_bounds = array<i64: 1>, scalar_prefetch = 0 : i64, scratch_operands = 1 : i64, tpu.core_type = #tpu.core_type<tc>, window_params = [{pipeline_mode = #tpu.pipeline_mode<synchronous>, transform_indices = @transform_0, window_bounds = array<i64: 2, 16, 8>}, {transform_indices = @transform_1, window_bounds = array<i64: 3, 8, 8>}, {transform_indices = @transform_2, window_bounds = array<i64: 1, 8>}, {transform_indices = @transform_3, window_bounds = array<i64: 1, 8>}, {transform_indices = @transform_4, window_bounds = array<i64: 1, 8>}, {transform_indices = @transform_5, window_bounds = array<i64: 2, 9, 8>}]} {
    %c0 = arith.constant 0 : index
    %c0_0 = arith.constant 0 : index
    %c0_1 = arith.constant 0 : index
    %0 = vector.load %arg1[%c0, %c0_0, %c0_1] : memref<2x16x8xf32, #tpu.memory_space<vmem>>, vector<2x16x8xf32>
    %1 = vector.shape_cast %0 : vector<2x16x8xf32> to vector<32x8xf32>
    %c0_2 = arith.constant 0 : index
    %c0_3 = arith.constant 0 : index
    %c0_4 = arith.constant 0 : index
    %2 = vector.load %arg2[%c0_2, %c0_3, %c0_4] : memref<3x8x8xf32, #tpu.memory_space<vmem>>, vector<1x8x8xf32>
    %3 = vector.shape_cast %2 : vector<1x8x8xf32> to vector<8x8xf32>
    %cst = arith.constant dense<0.000000e+00> : vector<32x8xf32>
    %4 = tpu.matmul %1, %3, %cst {dimension_numbers = #tpu.dot_dimension_numbers<[1], [0], [0], [1], [0, 0, 1, 1], [], []>} : vector<32x8xf32>, vector<8x8xf32>, vector<32x8xf32> -> vector<32x8xf32>
    %5 = vector.shape_cast %4 : vector<32x8xf32> to vector<2x16x8xf32>
    %6 = vector.extract_strided_slice %5 {offsets = [0, 14, 0], sizes = [2, 2, 8], strides = [1, 1, 1]} : vector<2x16x8xf32> to vector<2x2x8xf32>
    %7 = vector.extract_strided_slice %5 {offsets = [0, 0, 0], sizes = [2, 14, 8], strides = [1, 1, 1]} : vector<2x16x8xf32> to vector<2x14x8xf32>
    %8 = tpu.concatenate %6, %7 in 1 : vector<2x2x8xf32>, vector<2x14x8xf32> -> vector<2x16x8xf32>
    %c1 = arith.constant 1 : index
    %c0_5 = arith.constant 0 : index
    %c0_6 = arith.constant 0 : index
    %9 = vector.load %arg2[%c1, %c0_5, %c0_6] : memref<3x8x8xf32, #tpu.memory_space<vmem>>, vector<1x8x8xf32>
    %10 = vector.shape_cast %9 : vector<1x8x8xf32> to vector<8x8xf32>
    %cst_7 = arith.constant dense<0.000000e+00> : vector<32x8xf32>
    %11 = tpu.matmul %1, %10, %cst_7 {dimension_numbers = #tpu.dot_dimension_numbers<[1], [0], [0], [1], [0, 0, 1, 1], [], []>} : vector<32x8xf32>, vector<8x8xf32>, vector<32x8xf32> -> vector<32x8xf32>
    %12 = vector.shape_cast %11 : vector<32x8xf32> to vector<2x16x8xf32>
    %13 = vector.extract_strided_slice %12 {offsets = [0, 15, 0], sizes = [2, 1, 8], strides = [1, 1, 1]} : vector<2x16x8xf32> to vector<2x1x8xf32>
    %14 = vector.extract_strided_slice %12 {offsets = [0, 0, 0], sizes = [2, 15, 8], strides = [1, 1, 1]} : vector<2x16x8xf32> to vector<2x15x8xf32>
    %15 = tpu.concatenate %13, %14 in 1 : vector<2x1x8xf32>, vector<2x15x8xf32> -> vector<2x16x8xf32>
    %16 = arith.addf %8, %15 : vector<2x16x8xf32>
    %c2 = arith.constant 2 : index
    %c0_8 = arith.constant 0 : index
    %c0_9 = arith.constant 0 : index
    %17 = vector.load %arg2[%c2, %c0_8, %c0_9] : memref<3x8x8xf32, #tpu.memory_space<vmem>>, vector<1x8x8xf32>
    %18 = vector.shape_cast %17 : vector<1x8x8xf32> to vector<8x8xf32>
    %cst_10 = arith.constant dense<0.000000e+00> : vector<32x8xf32>
    %19 = tpu.matmul %1, %18, %cst_10 {dimension_numbers = #tpu.dot_dimension_numbers<[1], [0], [0], [1], [0, 0, 1, 1], [], []>} : vector<32x8xf32>, vector<8x8xf32>, vector<32x8xf32> -> vector<32x8xf32>
    %20 = vector.shape_cast %19 : vector<32x8xf32> to vector<2x16x8xf32>
    %21 = arith.addf %16, %20 : vector<2x16x8xf32>
    %c0_11 = arith.constant 0 : index
    %c0_12 = arith.constant 0 : index
    %22 = vector.load %arg3[%c0_11, %c0_12] : memref<1x8xf32, #tpu.memory_space<vmem>>, vector<1x8xf32>
    %23 = vector.shape_cast %22 : vector<1x8xf32> to vector<1x1x8xf32>
    %24 = vector.broadcast %23 : vector<1x1x8xf32> to vector<2x16x8xf32>
    %25 = arith.addf %21, %24 : vector<2x16x8xf32>
    %cst_13 = arith.constant dense<0.000000e+00> : vector<2x8xf32>
    %26 = vector.multi_reduction <add>, %25, %cst_13 [1] : vector<2x16x8xf32> to vector<2x8xf32>
    %27 = vector.shape_cast %26 : vector<2x8xf32> to vector<2x1x8xf32>
    %cst_14 = arith.constant dense<0.000000e+00> : vector<1x8xf32>
    %28 = vector.multi_reduction <add>, %27, %cst_14 [0] : vector<2x1x8xf32> to vector<1x8xf32>
    %29 = vector.shape_cast %28 : vector<1x8xf32> to vector<1x1x8xf32>
    %30 = vector.extract_strided_slice %25 {offsets = [0, 0, 0], sizes = [2, 2, 8], strides = [1, 1, 1]} : vector<2x16x8xf32> to vector<2x2x8xf32>
    %cst_15 = arith.constant dense<0.000000e+00> : vector<2x8xf32>
    %31 = vector.multi_reduction <add>, %30, %cst_15 [1] : vector<2x2x8xf32> to vector<2x8xf32>
    %32 = vector.shape_cast %31 : vector<2x8xf32> to vector<2x1x8xf32>
    %cst_16 = arith.constant dense<0.000000e+00> : vector<1x8xf32>
    %33 = vector.multi_reduction <add>, %32, %cst_16 [0] : vector<2x1x8xf32> to vector<1x8xf32>
    %34 = vector.shape_cast %33 : vector<1x8xf32> to vector<1x1x8xf32>
    %35 = arith.addf %29, %34 : vector<1x1x8xf32>
    %cst_17 = arith.constant 0.027777778 : f32
    %36 = vector.broadcast %cst_17 : f32 to vector<1x1x8xf32>
    %37 = arith.mulf %35, %36 : vector<1x1x8xf32>
    %38 = vector.broadcast %37 : vector<1x1x8xf32> to vector<2x16x8xf32>
    %39 = arith.subf %25, %38 : vector<2x16x8xf32>
    %40 = arith.mulf %39, %39 : vector<2x16x8xf32>
    %cst_18 = arith.constant dense<0.000000e+00> : vector<2x8xf32>
    %41 = vector.multi_reduction <add>, %40, %cst_18 [1] : vector<2x16x8xf32> to vector<2x8xf32>
    %42 = vector.shape_cast %41 : vector<2x8xf32> to vector<2x1x8xf32>
    %cst_19 = arith.constant dense<0.000000e+00> : vector<1x8xf32>
    %43 = vector.multi_reduction <add>, %42, %cst_19 [0] : vector<2x1x8xf32> to vector<1x8xf32>
    %44 = vector.shape_cast %43 : vector<1x8xf32> to vector<1x1x8xf32>
    %45 = vector.extract_strided_slice %39 {offsets = [0, 0, 0], sizes = [2, 2, 8], strides = [1, 1, 1]} : vector<2x16x8xf32> to vector<2x2x8xf32>
    %46 = vector.extract_strided_slice %39 {offsets = [0, 0, 0], sizes = [2, 2, 8], strides = [1, 1, 1]} : vector<2x16x8xf32> to vector<2x2x8xf32>
    %47 = arith.mulf %45, %46 : vector<2x2x8xf32>
    %cst_20 = arith.constant dense<0.000000e+00> : vector<2x8xf32>
    %48 = vector.multi_reduction <add>, %47, %cst_20 [1] : vector<2x2x8xf32> to vector<2x8xf32>
    %49 = vector.shape_cast %48 : vector<2x8xf32> to vector<2x1x8xf32>
    %cst_21 = arith.constant dense<0.000000e+00> : vector<1x8xf32>
    %50 = vector.multi_reduction <add>, %49, %cst_21 [0] : vector<2x1x8xf32> to vector<1x8xf32>
    %51 = vector.shape_cast %50 : vector<1x8xf32> to vector<1x1x8xf32>
    %52 = arith.addf %44, %51 : vector<1x1x8xf32>
    %cst_22 = arith.constant 0.027777778 : f32
    %53 = vector.broadcast %cst_22 : f32 to vector<1x1x8xf32>
    %54 = arith.mulf %52, %53 : vector<1x1x8xf32>
    %c0_23 = arith.constant 0 : index
    %c0_24 = arith.constant 0 : index
    %55 = vector.load %arg4[%c0_23, %c0_24] : memref<1x8xf32, #tpu.memory_space<vmem>>, vector<1x8xf32>
    %cst_25 = arith.constant 9.99999974E-6 : f32
    %56 = vector.broadcast %cst_25 : f32 to vector<1x1x8xf32>
    %57 = arith.addf %54, %56 : vector<1x1x8xf32>
    %58 = math.rsqrt %57 : vector<1x1x8xf32>
    %59 = vector.shape_cast %55 : vector<1x8xf32> to vector<1x1x8xf32>
    %60 = arith.mulf %59, %58 : vector<1x1x8xf32>
    %c0_26 = arith.constant 0 : index
    %c0_27 = arith.constant 0 : index
    %61 = vector.load %arg5[%c0_26, %c0_27] : memref<1x8xf32, #tpu.memory_space<vmem>>, vector<1x8xf32>
    %62 = arith.mulf %37, %60 : vector<1x1x8xf32>
    %63 = vector.shape_cast %61 : vector<1x8xf32> to vector<1x1x8xf32>
    %64 = arith.subf %63, %62 : vector<1x1x8xf32>
    %65 = vector.broadcast %60 : vector<1x1x8xf32> to vector<2x16x8xf32>
    %66 = arith.mulf %25, %65 : vector<2x16x8xf32>
    %67 = vector.broadcast %64 : vector<1x1x8xf32> to vector<2x16x8xf32>
    %68 = arith.addf %66, %67 : vector<2x16x8xf32>
    %cst_28 = arith.constant 0.000000e+00 : f32
    %69 = vector.broadcast %cst_28 : f32 to vector<2x16x8xf32>
    %70 = arith.cmpf ogt, %68, %69 : vector<2x16x8xf32>
    %cst_29 = arith.constant 0.000000e+00 : f32
    %71 = vector.broadcast %cst_29 : f32 to vector<2x16x8xf32>
    %72 = arith.minimumf %68, %71 : vector<2x16x8xf32>
    %73 = math.exp %72 : vector<2x16x8xf32>
    %cst_30 = arith.constant 1.000000e+00 : f32
    %74 = vector.broadcast %cst_30 : f32 to vector<2x16x8xf32>
    %75 = arith.subf %73, %74 : vector<2x16x8xf32>
    %76 = arith.select %70, %68, %75 : vector<2x16x8xi1>, vector<2x16x8xf32>
    %cst_31 = arith.constant 0xFF800000 : f32
    %77 = vector.broadcast %cst_31 : f32 to vector<2x1x8xf32>
    %c0_32 = arith.constant 0 : index
    %c0_33 = arith.constant 0 : index
    %c0_34 = arith.constant 0 : index
    %78 = vector.load %arg7[%c0_32, %c0_33, %c0_34] : memref<2x19x8xf32, #tpu.memory_space<vmem>>, vector<2x1x8xf32>
    tpu.vector_store %arg7[%c0_32, %c0_33, %c0_34], %77 {strides = array<i32>} : memref<2x19x8xf32, #tpu.memory_space<vmem>>, vector<2x1x8xf32>,
    %c0_35 = arith.constant 0 : index
    %c1_36 = arith.constant 1 : index
    %c0_37 = arith.constant 0 : index
    %79 = vector.load %arg7[%c0_35, %c1_36, %c0_37] : memref<2x19x8xf32, #tpu.memory_space<vmem>>, vector<2x16x8xf32>
    tpu.vector_store %arg7[%c0_35, %c1_36, %c0_37], %76 {strides = array<i32>} : memref<2x19x8xf32, #tpu.memory_space<vmem>>, vector<2x16x8xf32>,
    %80 = vector.extract_strided_slice %76 {offsets = [0, 0, 0], sizes = [2, 2, 8], strides = [1, 1, 1]} : vector<2x16x8xf32> to vector<2x2x8xf32>
    %c0_38 = arith.constant 0 : index
    %c17 = arith.constant 17 : index
    %c0_39 = arith.constant 0 : index
    %81 = vector.load %arg7[%c0_38, %c17, %c0_39] : memref<2x19x8xf32, #tpu.memory_space<vmem>>, vector<2x2x8xf32>
    tpu.vector_store %arg7[%c0_38, %c17, %c0_39], %80 {strides = array<i32>} : memref<2x19x8xf32, #tpu.memory_space<vmem>>, vector<2x2x8xf32>,
    %c0_40 = arith.constant 0 : index
    %c0_41 = arith.constant 0 : index
    %c0_42 = arith.constant 0 : index
    %82 = tpu.strided_load %arg7[%c0_40, %c0_41, %c0_42] {strides = array<i32: 1, 2, 1>} : memref<2x19x8xf32, #tpu.memory_space<vmem>>, vector<2x9x8xf32>
    %c0_43 = arith.constant 0 : index
    %c1_44 = arith.constant 1 : index
    %c0_45 = arith.constant 0 : index
    %83 = tpu.strided_load %arg7[%c0_43, %c1_44, %c0_45] {strides = array<i32: 1, 2, 1>} : memref<2x19x8xf32, #tpu.memory_space<vmem>>, vector<2x9x8xf32>
    %c0_46 = arith.constant 0 : index
    %c2_47 = arith.constant 2 : index
    %c0_48 = arith.constant 0 : index
    %84 = tpu.strided_load %arg7[%c0_46, %c2_47, %c0_48] {strides = array<i32: 1, 2, 1>} : memref<2x19x8xf32, #tpu.memory_space<vmem>>, vector<2x9x8xf32>
    %85 = arith.maximumf %82, %83 : vector<2x9x8xf32>
    %86 = arith.maximumf %85, %84 : vector<2x9x8xf32>
    %c0_49 = arith.constant 0 : index
    %c0_50 = arith.constant 0 : index
    %c0_51 = arith.constant 0 : index
    %87 = vector.load %arg6[%c0_49, %c0_50, %c0_51] : memref<2x9x8xf32, #tpu.memory_space<vmem>>, vector<2x9x8xf32>
    tpu.vector_store %arg6[%c0_49, %c0_50, %c0_51], %86 {strides = array<i32>} : memref<2x9x8xf32, #tpu.memory_space<vmem>>, vector<2x9x8xf32>,
    return
  }
  func.func @transform_0(%arg0: i32) -> (i32, i32, i32) {
    %c0_i32 = arith.constant 0 : i32
    %c0_i32_0 = arith.constant 0 : i32
    %c0_i32_1 = arith.constant 0 : i32
    %c0_i32_2 = arith.constant 0 : i32
    return %c0_i32, %c0_i32_0, %c0_i32_1 : i32, i32, i32
  }
  func.func @transform_1(%arg0: i32) -> (i32, i32, i32) {
    %c0_i32 = arith.constant 0 : i32
    %c0_i32_0 = arith.constant 0 : i32
    %c0_i32_1 = arith.constant 0 : i32
    return %c0_i32, %c0_i32_0, %arg0 : i32, i32, i32
  }
  func.func @transform_2(%arg0: i32) -> (i32, i32) {
    %c0_i32 = arith.constant 0 : i32
    %c0_i32_0 = arith.constant 0 : i32
    return %c0_i32, %arg0 : i32, i32
  }
  func.func @transform_3(%arg0: i32) -> (i32, i32) {
    %c0_i32 = arith.constant 0 : i32
    %c0_i32_0 = arith.constant 0 : i32
    return %c0_i32, %arg0 : i32, i32
  }
  func.func @transform_4(%arg0: i32) -> (i32, i32) {
    %c0_i32 = arith.constant 0 : i32
    %c0_i32_0 = arith.constant 0 : i32
    return %c0_i32, %arg0 : i32, i32
  }
  func.func @transform_5(%arg0: i32) -> (i32, i32, i32) {
    %c0_i32 = arith.constant 0 : i32
    %c0_i32_0 = arith.constant 0 : i32
    %c0_i32_1 = arith.constant 0 : i32
    return %c0_i32, %c0_i32_0, %arg0 : i32, i32, i32
  }
}

</mosaic_0001>

<bundles_post_ra>
// kernel: tpu_custom_call.1
= control target key start
LH: loop header
LB: loop body
LE: loop exit
PB: predicated region body
PF: predicated region fallthrough
CT: control target
= control target key end

     0   :  { %vm25_vm0 = vcmask 64512   ;;  %vm494_vm1 = vcmask 57344   ;;  %v613_v7 = vmov -inf   ;;  %vm131_vm2 = vcmask 1041408   ;;  %s760_s1 = inlined_call_operand.vmem [shape: f32[3,8,8], index: 1, kind: input, shape index: {}]   ;;  %s761_s0 = inlined_call_operand.vmem [shape: f32[2,16,8], index: 0, kind: input, shape index: {}]   ;;  %s762_s2 = inlined_call_operand.vmem [shape: f32[1,8], index: 2, kind: input, shape index: {}]   ;;  %s763_s3 = inlined_call_operand.vmem [shape: f32[1,8], index: 3, kind: input, shape index: {}]   ;;  %s764_s4 = inlined_call_operand.vmem [shape: f32[1,8], index: 4, kind: input, shape index: {}]   ;;  %s765_s5 = inlined_call_operand.vmem [shape: f32[2,9,8], index: 5, kind: output, shape index: {}]  }
   0x1   :  { %v24_v0 = vld [vmem:[%s760_s1] sm:$0xff]  ;;  %v22_v1 = vld [vmem:[%s761_s0 + $0x10] sm:$0xff]  ;;  %v23_v2 = vld [vmem:[%s761_s0 + $0x18] sm:$0xff]  ;;  %495 = vst.msk [vmem:[#allocation2] sm:$0x1] %vm494_vm1, %v613_v7  ;;  %vm237_vm3 = vcmask 1040384  }
   0x2   :  { %600 = vmatprep.subr.mxu1 %v24_v0  ;;  %581 = vmatprep.mubr.msk.f32.mxu1 %vm25_vm0, %v22_v1  ;;  %v546_v3 = vld [vmem:[%s760_s1 + $0x8] sm:$0xff]  ;;  %v20_v4 = vld [vmem:[%s761_s0] sm:$0xff]  ;;  %v551_v6 = vld [vmem:[%s760_s1 + $0x10] sm:$0xff]  ;;  %496 = vst.msk [vmem:[#allocation2 + $0x18] sm:$0x1] %vm494_vm1, %v613_v7  ;;  %vm375_vm4 = vcmask 58368  }
   0x3   :  { %601 = vmatpush3.msra.mxu1 %v24_v0  ;;  %576 = vmatprep.subr.mxu0 %v24_v0  ;;  %v21_v5 = vld [vmem:[%s761_s0 + $0x8] sm:$0xff]  ;;  %v556_v34 = vld [vmem:[%s762_s2] ss:$0 sm:$0xff] }
   0x4   :  { %582 = vmatmul.mubr.msk.f32.vlgmr.msra.gmra.mrb[0].mxu1 %vm25_vm0, %v23_v2  ;;  %584 = vmatprep.subr.mxu1 %v546_v3 }
   0x5   :  { %585 = vmatpush3.msra.mxu1 %v546_v3  ;;  %577 = vmatpush3.msra.mxu0 %v24_v0 }
   0x6   :  { %578 = vmatprep.mubr.msk.f32.mxu0 %vm25_vm0, %v20_v4  ;;  %586 = vmatprep.mubr.msk.f32.mxu1 %vm25_vm0, %v20_v4 }
   0x7   :  { %579 = vmatmul.mubr.msk.f32.vlgmr.msra.gmra.mrb[0].mxu0 %vm25_vm0, %v21_v5  ;;  %592 = vmatprep.subr.mxu0 %v551_v6 }
   0x8   :  { %587 = vmatmul.mubr.msk.f32.vlgmr.msra.gmra.mrb[2].mxu1 %vm25_vm0, %v21_v5  ;;  %593 = vmatpush3.msra.mxu0 %v551_v6 }
   0x9   :  { %589 = vmatprep.mubr.msk.f32.mxu1 %vm25_vm0, %v22_v1  ;;  %594 = vmatprep.mubr.msk.f32.mxu0 %vm25_vm0, %v20_v4 }
   0xb   :  { %595 = vmatmul.mubr.msk.f32.vlgmr.msra.gmra.mrb[2].mxu0 %vm25_vm0, %v21_v5 }
   0xc   :  { %590 = vmatmul.mubr.msk.f32.gmra.mrb[4].mxu1 %vm25_vm0, %v23_v2  ;;  %597 = vmatprep.mubr.msk.f32.mxu0 %vm25_vm0, %v22_v1 }
   0xf   :  { %598 = vmatmul.mubr.msk.f32.gmra.mrb[4].mxu0 %vm25_vm0, %v23_v2 }
  0xd7   :  { %v583_v8 = vpop.f32.mrb[0].mxu1 }
  0xd8   :  { %v126_v9 = vrot.slane %v583_v8, 6  ;;  %v114_v10 = vpop.f32.mrb[1].mxu1 }
  0xd9   :  { %v134_v11 = vrot.slane %v114_v10, 6 }
  0xda   :  { %v580_v12 = vpop.f32.mrb[0].mxu0 }
  0xdb   :  { %v125_v13 = vrot.slane %v580_v12, 6  ;;  %v588_v14 = vpop.f32.mrb[2].mxu1  ;;  %v104_v15 = vpop.f32.mrb[1].mxu0  ;;  %v135_v16 = vsel %vm131_vm2, %v134_v11, %v126_v9  ;;  %v141_v17 = vsel %vm131_vm2, %v126_v9, %v134_v11 }
  0xdc   :  { %v231_v18 = vrot.slane %v588_v14, 7  ;;  %v132_v19 = vrot.slane %v104_v15, 6  ;;  %v210_v20 = vpop.f32.mrb[3].mxu1 }
  0xdd   :  { %v238_v21 = vrot.slane %v210_v20, 7 }
  0xde   :  { %v133_v22 = vsel %vm131_vm2, %v132_v19, %v125_v13  ;;  %v596_v23 = vpop.f32.mrb[2].mxu0  ;;  %v140_v24 = vsel %vm131_vm2, %v125_v13, %v132_v19 }
  0xdf   :  { %v591_v25 = vpop.f32.mrb[4].mxu1  ;;  %v239_v26 = vsel %vm237_vm3, %v238_v21, %v231_v18  ;;  %v246_v27 = vsel %vm237_vm3, %v231_v18, %v238_v21  ;;  %v320_v28 = vpop.f32.mrb[3].mxu0 }
  0xe0   :  { %v232_v29 = vrot.slane %v591_v25, 7  ;;  %v220_v30 = vpop.f32.mrb[5].mxu1  ;;  %v249_v31 = vadd.f32 %v239_v26, %v133_v22  ;;  %v248_v32 = vadd.f32 %v246_v27, %v140_v24 }
  0xe1   :  { %v240_v33 = vrot.slane %v220_v30, 7 }
  0xe2   :  { %v340_v35 = vadd.f32 %v596_v23, %v249_v31  ;;  %v339_v36 = vadd.f32 %v320_v28, %v248_v32  ;;  %v599_v37 = vpop.f32.mrb[4].mxu0 }
  0xe3   :  { %v241_v38 = vsel %vm237_vm3, %v240_v33, %v232_v29  ;;  %v247_v39 = vsel %vm237_vm3, %v232_v29, %v240_v33  ;;  %v330_v40 = vpop.f32.mrb[5].mxu0 }
  0xe4   :  { %v690_v41 = vadd.f32 %v556_v34, %v340_v35  ;;  %v692_v42 = vadd.f32 %v556_v34, %v339_v36  ;;  %v251_v43 = vadd.f32 %v241_v38, %v135_v16  ;;  %v250_v44 = vadd.f32 %v247_v39, %v141_v17 }
  0xe6   :  { %v355_v45 = vsel %vm25_vm0, %v690_v41, 0.0  ;;  %v354_v46 = vsel %vm25_vm0, %v692_v42, 0.0  ;;  %v376_v47 = vsel %vm375_vm4, %v692_v42, 0.0  ;;  %v342_v48 = vadd.f32 %v599_v37, %v251_v43 }
  0xe7   :  { %v356_v49 = vadd.f32 %v355_v45, %v354_v46  ;;  %v377_v50 = vrot.slane %v376_v47, 4  ;;  %v341_v51 = vadd.f32 %v330_v40, %v250_v44 }
  0xe8   :  { %v700_v52 = vadd.f32 %v556_v34, %v342_v48 }
  0xe9   :  { %v357_v53 = vrot.slane %v356_v49, 4  ;;  %v378_v54 = vadd.f32 %v377_v50, %v376_v47  ;;  %v702_v55 = vadd.f32 %v556_v34, %v341_v51 }
  0xea   :  { %v364_v56 = vsel %vm25_vm0, %v700_v52, 0.0 }
  0xeb   :  { %v358_v57 = vadd.f32 %v357_v53, %v356_v49  ;;  %v379_v58 = vrot.slane %v378_v54, 2  ;;  %v363_v59 = vsel %vm25_vm0, %v702_v55, 0.0  ;;  %v383_v60 = vsel %vm375_vm4, %v702_v55, 0.0 }
  0xec   :  { %v365_v61 = vadd.f32 %v364_v56, %v363_v59  ;;  %v384_v62 = vrot.slane %v383_v60, 4 }
  0xed   :  { %v359_v63 = vrot.slane %v358_v57, 2  ;;  %v380_v0 = vadd.f32 %v379_v58, %v378_v54 }
  0xee   :  { %v366_v1 = vrot.slane %v365_v61, 4  ;;  %v385_v2 = vadd.f32 %v384_v62, %v383_v60 }
  0xef   :  { %v360_v3 = vadd.f32 %v359_v63, %v358_v57  ;;  %v381_v7 = vrot.slane %v380_v0, 1 }
  0xf0   :  { %v367_v4 = vadd.f32 %v366_v1, %v365_v61  ;;  %v386_v5 = vrot.slane %v385_v2, 2 }
  0xf1   :  { %v361_v6 = vrot.slane %v360_v3, 1  ;;  %v382_v13 = vadd.f32 %v381_v7, %v380_v0 }
  0xf2   :  { %v368_v8 = vrot.slane %v367_v4, 2  ;;  %v387_v9 = vadd.f32 %v386_v5, %v385_v2 }
  0xf3   :  { %v362_v12 = vadd.f32 %v361_v6, %v360_v3  ;;  %v390_v19 = vsel %vm25_vm0, %v382_v13, 0.0 }
  0xf4   :  { %v369_v10 = vadd.f32 %v368_v8, %v367_v4  ;;  %v388_v11 = vrot.slane %v387_v9, 1 }
  0xf5   :  { %v372_v18 = vsel %vm25_vm0, %v362_v12, 0.0 }
  0xf6   :  { %v370_v14 = vrot.slane %v369_v10, 1  ;;  %v389_v15 = vadd.f32 %v388_v11, %v387_v9 }
  0xf8   :  { %v371_v16 = vadd.f32 %v370_v14, %v369_v10  ;;  %v391_v17 = vsel %vm25_vm0, %v389_v15, 0.0  ;;  %v451_v14 = vlaneseq }
  0xf9   :  { %v392_v22 = vadd.f32 %v391_v17, %v390_v19 }
  0xfa   :  { %v373_v20 = vsel %vm25_vm0, %v371_v16, 0.0  ;;  %v452_v15 = vshrl.u32 %v451_v14, 7  ;;  %v443_v16 = vld [vmem:[%s763_s3] sm:$0x1] }
  0xfb   :  { %v374_v21 = vadd.f32 %v373_v20, %v372_v18  ;;  %v447_v20 = vld [vmem:[%s764_s4] sm:$0x1] }
  0xfc   :  { %v453_v17 = vsub.s32 0, %v452_v15 }
  0xfd   :  { %v393_v23 = vadd.f32 %v392_v22, %v374_v21 }
  0xff   :  { %v394_v24 = vmul.f32 0.027777778, %v393_v23 }
 0x101   :  { %v395_v25 = vsub.f32 %v692_v42, %v394_v24  ;;  %v396_v26 = vsub.f32 %v690_v41, %v394_v24  ;;  %v397_v27 = vsub.f32 %v702_v55, %v394_v24  ;;  %v398_v28 = vsub.f32 %v700_v52, %v394_v24 }
 0x103   :  { %v399_v29 = vmul.f32 %v395_v25, %v395_v25  ;;  %v400_v30 = vmul.f32 %v396_v26, %v396_v26  ;;  %v401_v31 = vmul.f32 %v397_v27, %v397_v27  ;;  %v402_v32 = vmul.f32 %v398_v28, %v398_v28 }
 0x105   :  { %v403_v33 = vsel %vm25_vm0, %v399_v29, 0.0  ;;  %v404_v34 = vsel %vm25_vm0, %v400_v30, 0.0  ;;  %v412_v35 = vsel %vm25_vm0, %v401_v31, 0.0  ;;  %v413_v36 = vsel %vm25_vm0, %v402_v32, 0.0 }
 0x106   :  { %v405_v37 = vadd.f32 %v404_v34, %v403_v33  ;;  %v414_v38 = vadd.f32 %v413_v36, %v412_v35  ;;  %v424_v39 = vsel %vm375_vm4, %v399_v29, 0.0  ;;  %v431_v40 = vsel %vm375_vm4, %v401_v31, 0.0 }
 0x107   :  { %v425_v43 = vrot.slane %v424_v39, 4  ;;  %v432_v44 = vrot.slane %v431_v40, 4 }
 0x108   :  { %v406_v45 = vrot.slane %v405_v37, 4  ;;  %v415_v46 = vrot.slane %v414_v38, 4 }
 0x109   :  { %v426_v47 = vadd.f32 %v425_v43, %v424_v39  ;;  %v433_v48 = vadd.f32 %v432_v44, %v431_v40 }
 0x10a   :  { %v407_v49 = vadd.f32 %v406_v45, %v405_v37  ;;  %v416_v50 = vadd.f32 %v415_v46, %v414_v38 }
 0x10b   :  { %v427_v51 = vrot.slane %v426_v47, 2  ;;  %v434_v53 = vrot.slane %v433_v48, 2 }
 0x10c   :  { %v408_v54 = vrot.slane %v407_v49, 2  ;;  %v417_v56 = vrot.slane %v416_v50, 2 }
 0x10d   :  { %v428_v57 = vadd.f32 %v427_v51, %v426_v47  ;;  %v435_v58 = vadd.f32 %v434_v53, %v433_v48 }
 0x10e   :  { %v409_v59 = vadd.f32 %v408_v54, %v407_v49  ;;  %v418_v60 = vadd.f32 %v417_v56, %v416_v50 }
 0x10f   :  { %v429_v61 = vrot.slane %v428_v57, 1  ;;  %v436_v62 = vrot.slane %v435_v58, 1 }
 0x110   :  { %v410_v63 = vrot.slane %v409_v59, 1  ;;  %v419_v0 = vrot.slane %v418_v60, 1 }
 0x111   :  { %v430_v1 = vadd.f32 %v429_v61, %v428_v57  ;;  %v437_v2 = vadd.f32 %v436_v62, %v435_v58 }
 0x112   :  { %v411_v3 = vadd.f32 %v410_v63, %v409_v59  ;;  %v420_v4 = vadd.f32 %v419_v0, %v418_v60 }
 0x113   :  { %v438_v5 = vsel %vm25_vm0, %v430_v1, 0.0  ;;  %v439_v6 = vsel %vm25_vm0, %v437_v2, 0.0 }
 0x114   :  { %v421_v7 = vsel %vm25_vm0, %v411_v3, 0.0  ;;  %v422_v8 = vsel %vm25_vm0, %v420_v4, 0.0  ;;  %v440_v10 = vadd.f32 %v439_v6, %v438_v5 }
 0x115   :  { %v423_v9 = vadd.f32 %v422_v8, %v421_v7 }
 0x117   :  { %v441_v11 = vadd.f32 %v440_v10, %v423_v9 }
 0x119   :  { %v442_v12 = vmul.f32 0.027777778, %v441_v11 }
 0x11b   :  { %v444_v13 = vadd.f32 1e-05, %v442_v12 }
 0x11d   :  { %603 = vrsqrt.f32 %v444_v13 }
 0x127   :  { %v604_v18 = vpop.eup %603 }
 0x128   :  { %v446_v19 = vmul.f32 %v604_v18, %v443_v16 }
 0x12a   :  { %v448_v21 = vmul.f32 %v446_v19, %v394_v24  ;;  %v454_v22 = vrot.slane %v446_v19, %v453_v17 }
 0x12c   :  { %v449_v23 = vsub.f32 %v447_v20, %v448_v21  ;;  %v456_v25 = vmul.f32 %v454_v22, %v692_v42  ;;  %v457_v26 = vmul.f32 %v454_v22, %v690_v41  ;;  %v458_v27 = vmul.f32 %v454_v22, %v702_v55 }
 0x12d   :  { %v459_v28 = vmul.f32 %v454_v22, %v700_v52 }
 0x12e   :  { %v464_v29 = vrot.slane %v449_v23, %v453_v17 }
 0x130   :  { %v466_v30 = vadd.f32 %v464_v29, %v456_v25  ;;  %v467_v31 = vadd.f32 %v464_v29, %v457_v26  ;;  %v468_v32 = vadd.f32 %v464_v29, %v458_v27  ;;  %v469_v33 = vadd.f32 %v464_v29, %v459_v28 }
 0x132   :  { %v474_v34 = vmin.f32 %v466_v30, 0.0  ;;  %v475_v35 = vmin.f32 %v467_v31, 0.0  ;;  %v476_v36 = vmin.f32 %v468_v32, 0.0  ;;  %v477_v37 = vmin.f32 %v469_v33, 0.0 }
 0x133   :  { %vm470_vm5 = vcmp.gt.f32.partialorder %v466_v30, 0.0  ;;  %vm471_vm6 = vcmp.gt.f32.partialorder %v467_v31, 0.0  ;;  %vm472_vm7 = vcmp.gt.f32.partialorder %v468_v32, 0.0  ;;  %vm473_vm8 = vcmp.gt.f32.partialorder %v469_v33, 0.0 }
 0x134   :  { %v478_v24 = vmul.f32 1.442695, %v474_v34  ;;  %v480_v38 = vmul.f32 1.442695, %v475_v35  ;;  %v482_v39 = vmul.f32 1.442695, %v476_v36 }
 0x135   :  { %v484_v40 = vmul.f32 1.442695, %v477_v37 }
 0x136   :  { %605 = vpow2.f32 %v478_v24 }
 0x137   :  { %607 = vpow2.f32 %v480_v38 }
 0x138   :  { %609 = vpow2.f32 %v482_v39 }
 0x139   :  { %611 = vpow2.f32 %v484_v40 }
 0x140   :  { %v606_v41 = vpop.eup %605 }
 0x141   :  { %v608_v42 = vpop.eup %607  ;;  %v557_v52 = vadd.f32 -1.0, %v606_v41 }
 0x142   :  { %v610_v55 = vpop.eup %609  ;;  %v558_v43 = vadd.f32 -1.0, %v608_v42 }
 0x143   :  { %v612_v44 = vpop.eup %611  ;;  %v559_v45 = vadd.f32 -1.0, %v610_v55  ;;  %v490_v46 = vsel %vm470_vm5, %v466_v30, %v557_v52 }
 0x144   :  { %v560_v47 = vadd.f32 -1.0, %v612_v44  ;;  %v491_v48 = vsel %vm471_vm6, %v467_v31, %v558_v43  ;;  %497 = vst.msk [vmem:[#allocation2 + $0x1] sm:$0xff] %vm25_vm0, %v490_v46 }
 0x145   :  { %501 = vst.msk [vmem:[#allocation2 + $0x11] sm:$0x3] %vm375_vm4, %v490_v46  ;;  %v492_v49 = vsel %vm472_vm7, %v468_v32, %v559_v45 }
 0x146   :  { %498 = vst.msk [vmem:[#allocation2 + $0x9] sm:$0xff] %vm25_vm0, %v491_v48  ;;  %v493_v50 = vsel %vm473_vm8, %v469_v33, %v560_v47  ;;  %499 = vst.msk [vmem:[#allocation2 + $0x19] sm:$0xff] %vm25_vm0, %v492_v49 }
 0x147   :  { %502 = vst.msk [vmem:[#allocation2 + $0x29] sm:$0x3] %vm375_vm4, %v492_v49 }
 0x148   :  { %500 = vst.msk [vmem:[#allocation2 + $0x21] sm:$0xff] %vm25_vm0, %v493_v50 }
 0x14c   :  { %v513_v51 = vld [vmem:[#allocation2 + $0x11] ss:$2 sm:$0x1]  ;;  %v521_v56 = vld [vmem:[#allocation2 + $0x12] ss:$2 sm:$0x1] }
 0x14d   :  { %v503_v53 = vld [vmem:[#allocation2] ss:$2 sm:$0xff]  ;;  %v505_v54 = vld [vmem:[#allocation2 + $0x10] ss:$2 sm:$0x1] }
 0x14e   :  { %v511_v57 = vld [vmem:[#allocation2 + $0x1] ss:$2 sm:$0xff]  ;;  %v527_v59 = vmax.f32 %v505_v54, %v513_v51  ;;  %v519_v0 = vld [vmem:[#allocation2 + $0x2] ss:$2 sm:$0xff] }
 0x14f   :  { %v517_v58 = vld [vmem:[#allocation2 + $0x29] ss:$2 sm:$0x1]  ;;  %v507_v60 = vld [vmem:[#allocation2 + $0x18] ss:$2 sm:$0xff]  ;;  %v526_v62 = vmax.f32 %v503_v53, %v511_v57 }
 0x150   :  { %v509_v61 = vld [vmem:[#allocation2 + $0x28] ss:$2 sm:$0x1]  ;;  %v515_v63 = vld [vmem:[#allocation2 + $0x19] ss:$2 sm:$0xff]  ;;  %v531_v2 = vmax.f32 %v527_v59, %v521_v56 }
 0x151   :  { %v529_v1 = vmax.f32 %v509_v61, %v517_v58  ;;  %v525_v3 = vld [vmem:[#allocation2 + $0x2a] ss:$2 sm:$0x1]  ;;  %v528_v4 = vmax.f32 %v507_v60, %v515_v63  ;;  %v530_v5 = vmax.f32 %v526_v62, %v519_v0  ;;  %v523_v6 = vld [vmem:[#allocation2 + $0x1a] ss:$2 sm:$0xff] }
 0x152   :  { %535 = vst.msk [vmem:[%s765_s5 + $0x8] sm:$0x1] %vm494_vm1, %v531_v2 }
 0x153   :  { %v533_v7 = vmax.f32 %v529_v1, %v525_v3  ;;  %v532_v8 = vmax.f32 %v528_v4, %v523_v6  ;;  %534 = vst.msk [vmem:[%s765_s5] sm:$0xff] %vm25_vm0, %v530_v5 }
 0x155   :  { %537 = vst.msk [vmem:[%s765_s5 + $0x18] sm:$0x1] %vm494_vm1, %v533_v7 }
 0x156   :  { %536 = vst.msk [vmem:[%s765_s5 + $0x10] sm:$0xff] %vm25_vm0, %v532_v8 }

</bundles_post_ra>
